<compile_context>
chip_gen: v5e
topology: v5e:2x2
jax: 0.10.0
libtpu: 0.0.40
codegen_flags: <defaults>
</compile_context>

<pallas_src>
import functools

import jax
import jax.numpy as jnp
from jax.experimental import pallas as pl
from jax.experimental.pallas import tpu as pltpu


def _round_up(x, m):
    return (x + m - 1) // m * m


def _cdiv(a, b):
    return -(-a // b)


# ---------------------------------------------------------------------------
# Kernel
# ---------------------------------------------------------------------------
def _critic_kernel(s_ref, a_ref, w1_ref, w23_ref, aux_ref, q_ref, *, sd_p, ad_p, hp):
    f32 = jnp.float32

    # ---- Layer 1 (fused heads, side-by-side lanes; concat folded into 2 dots).
    h = (jnp.dot(s_ref[...], w1_ref[0:sd_p, :], preferred_element_type=f32)
         + jnp.dot(a_ref[...], w1_ref[sd_p:sd_p + ad_p, :], preferred_element_type=f32)
         + aux_ref[0:1, :])
    h = jnp.maximum(h, 0.0)                                    # (tb, 2*hp) f32

    qs = []
    for head in range(2):                                      # unrolled at trace time
        lo = head * hp
        hh = h[:, lo:lo + hp]                                  # 128-aligned lane slice
        # ---- Layers 2 & 3: per-head (hp x hp) dots, bf16 operands, f32 acc.
        for layer in range(2):
            blk = (2 * layer + head) * hp
            w = w23_ref[blk:blk + hp, :]
            b = aux_ref[1 + layer:2 + layer, lo:lo + hp]
            hh = jnp.maximum(
                jnp.dot(hh.astype(jnp.bfloat16), w, preferred_element_type=f32) + b,
                0.0)
        # ---- Layer 4 (hidden -> 1): VPU multiply + XLU lane reduction, f32.
        w4 = aux_ref[3:4, lo:lo + hp]                          # (1, hp)
        b4 = aux_ref[4:5, head:head + 1]                       # (1, 1)
        qs.append(jnp.sum(hh * w4, axis=-1, keepdims=True) + b4)

    q_ref[...] = jnp.concatenate(qs, axis=1)                   # (tb, 2)


# ---------------------------------------------------------------------------
# Parameter packing (wrapper side, done once)
# ---------------------------------------------------------------------------
def _pack_params(params, state_dim, action_dim, hidden_dim):
    """Packs the 16 per-head tensors into 3 buffers:
         w1  : (sd_p + ad_p, 2*Hp) bf16  layer-1 weights, heads side-by-side in lanes
         w23 : (4*Hp, Hp)          bf16  [W2_h0; W2_h1; W3_h0; W3_h1] stacked in sublanes
         aux : (8, 2*Hp)           f32   rows: b1 | b2 | b3 | W4-rows | b4(lane=head)
    """
    H = hidden_dim
    hp = _round_up(H, 128)
    sd_p = _round_up(state_dim, 8)
    ad_p = _round_up(action_dim, 8)

    def layers(head):
        return [params[head][f"l{i}"] for i in range(1, 5)]

    (w1a, b1a), (w2a, b2a), (w3a, b3a), (w4a, b4a) = layers("mlp1")
    (w1b, b1b), (w2b, b2b), (w3b, b3b), (w4b, b4b) = layers("mlp2")

    def side_by_side(ma, mb, rows):
        out = jnp.zeros((rows, 2 * hp), jnp.float32)
        out = out.at[: ma.shape[0], 0:H].set(ma)
        out = out.at[: mb.shape[0], hp:hp + H].set(mb)
        return out

    w1 = jnp.concatenate(
        [side_by_side(w1a[:state_dim], w1b[:state_dim], sd_p),   # state-row block
         side_by_side(w1a[state_dim:], w1b[state_dim:], ad_p)],  # action-row block
        axis=0).astype(jnp.bfloat16)

    def pad_hh(m):
        return jnp.pad(m, ((0, hp - H), (0, hp - H)))

    w23 = jnp.concatenate(
        [pad_hh(w2a), pad_hh(w2b), pad_hh(w3a), pad_hh(w3b)],
        axis=0).astype(jnp.bfloat16)

    aux = jnp.zeros((8, 2 * hp), jnp.float32)
    aux = aux.at[0, 0:H].set(b1a).at[0, hp:hp + H].set(b1b)            # b1
    aux = aux.at[1, 0:H].set(b2a).at[1, hp:hp + H].set(b2b)            # b2
    aux = aux.at[2, 0:H].set(b3a).at[2, hp:hp + H].set(b3b)            # b3
    aux = aux.at[3, 0:H].set(w4a[:, 0]).at[3, hp:hp + H].set(w4b[:, 0])  # W4 rows
    aux = aux.at[4, 0].set(b4a[0]).at[4, 1].set(b4b[0])                # b4
    return w1, w23, aux


# ---------------------------------------------------------------------------
# Forward wrapper
# ---------------------------------------------------------------------------
def critic_forward(state, action, params):
    """Equivalent of Critic.forward(state, action) -> (q1, q2)."""
    batch, sd = state.shape
    ad = action.shape[1]
    H = params["mlp1"]["l1"][0].shape[1]
    hp = _round_up(H, 128)
    sd_p = _round_up(sd, 8)
    ad_p = _round_up(ad, 8)

    w1, w23, aux = _pack_params(params, sd, ad, H)

    # Batch tiling: >=2 (even) grid steps when the batch allows it so the
    # "parallel" axis shards across v7x's two TensorCores; tiles capped at
    # 1024 rows to amortize per-grid-step overhead for large batches.
    cap = 1024
    if batch <= 8:
        tb = max(_round_up(batch, 8), 8)
    else:
        steps = max(2, _cdiv(batch, cap))
        steps += steps % 2                      # even number of steps for 2 TCs
        tb = _round_up(_cdiv(batch, steps), 8)
    bp = _round_up(batch, tb)
    grid = (bp // tb,)

    sb = jnp.pad(state, ((0, bp - batch), (0, sd_p - sd))).astype(jnp.bfloat16)
    ab = jnp.pad(action, ((0, bp - batch), (0, ad_p - ad))).astype(jnp.bfloat16)

    kernel = functools.partial(_critic_kernel, sd_p=sd_p, ad_p=ad_p, hp=hp)

    # Logical (non-padded, non-zero) work only.
    flops = 2 * bp * 2 * ((sd + ad) * H + 2 * H * H + H)
    bytes_accessed = ((sb.size + ab.size + w1.size + w23.size) * 2
                      + aux.size * 4 + bp * 2 * 4)
    cost = pl.CostEstimate(flops=flops, transcendentals=0,
                           bytes_accessed=bytes_accessed)

    def run(single_buffer_weights):
        if single_buffer_weights:
            # Resident (constant index_map) params never re-fetch; one buffer
            # halves their VMEM footprint (matters for large H on v7x).
            def resident(shape):
                return pl.BlockSpec(shape, lambda i: (0, 0),
                                    pipeline_mode=pl.Buffered(1))
        else:
            def resident(shape):
                return pl.BlockSpec(shape, lambda i: (0, 0))

        q = pl.pallas_call(
            kernel,
            out_shape=jax.ShapeDtypeStruct((bp, 2), jnp.float32),
            grid_spec=pltpu.PrefetchScalarGridSpec(
                num_scalar_prefetch=0,
                grid=grid,
                in_specs=[
                    pl.BlockSpec((tb, sd_p), lambda i: (i, 0)),   # state tile
                    pl.BlockSpec((tb, ad_p), lambda i: (i, 0)),   # action tile
                    resident(w1.shape),                           # layer-1 weights
                    resident(w23.shape),                          # layer-2/3 weights
                    resident(aux.shape),                          # biases + W4 rows
                ],
                out_specs=pl.BlockSpec((tb, 2), lambda i: (i, 0)),
            ),
            compiler_params=pltpu.CompilerParams(
                dimension_semantics=("parallel",),   # shards across v7x's 2 TCs
                vmem_limit_bytes=48 << 20,           # explicit budget, < v7x 64 MiB
            ),
            cost_estimate=cost,
        )(sb, ab, w1, w23, aux)
        return jax.block_until_ready(q)

    try:
        q = run(True)
    except Exception:
        # pipeline_mode=pl.Buffered(1) unsupported on this jax build; fall back
        # to default double-buffered resident weights (correctness identical).
        q = run(False)

    q = q[:batch]
    return q[:, 0:1], q[:, 1:2]


# ---------------------------------------------------------------------------
# Init + references (PyTorch-style uniform +/- 1/sqrt(fan_in))
# ---------------------------------------------------------------------------
def init_critic_params(key, state_dim, action_dim, hidden_dim):
    dims = [
        (state_dim + action_dim, hidden_dim),
        (hidden_dim, hidden_dim),
        (hidden_dim, hidden_dim),
        (hidden_dim, 1),
    ]
    params = {}
    for head in ("mlp1", "mlp2"):
        head_params = {}
        for i, (fan_in, fan_out) in enumerate(dims, start=1):
            key, kw, kb = jax.random.split(key, 3)
            bound = 1.0 / jnp.sqrt(fan_in)
            w = jax.random.uniform(kw, (fan_in, fan_out), jnp.float32, -bound, bound)
            b = jax.random.uniform(kb, (fan_out,), jnp.float32, -bound, bound)
            head_params[f"l{i}"] = (w, b)
        params[head] = head_params
    return params


_HI = jax.lax.Precision.HIGHEST


def _reference_forward(state, action, params):
    """Pure-f32 math, mirrors the PyTorch module exactly."""
    x = jnp.concatenate([state, action], axis=1)

    def mlp(head):
        h = x
        for i in range(1, 4):
            w, b = params[head][f"l{i}"]
            h = jnp.maximum(jnp.dot(h, w, precision=_HI) + b, 0.0)
        w, b = params[head]["l4"]
        return jnp.dot(h, w, precision=_HI) + b

    return mlp("mlp1"), mlp("mlp2")


def _emulated_reference(state, action, params):
    """Same math as the kernel: bf16 matmul operands, f32 accumulation."""
    bf = lambda t: t.astype(jnp.bfloat16).astype(jnp.float32)
    x = jnp.concatenate([bf(state), bf(action)], axis=1)

    def mlp(head):
        (w1, b1), (w2, b2), (w3, b3), (w4, b4) = [
            params[head][f"l{i}"] for i in range(1, 5)]
        h = jnp.maximum(jnp.dot(x, bf(w1), precision=_HI) + b1, 0.0)
        h = jnp.maximum(jnp.dot(bf(h), bf(w2), precision=_HI) + b2, 0.0)
        h = jnp.maximum(jnp.dot(bf(h), bf(w3), precision=_HI) + b3, 0.0)
        return jnp.dot(h, w4, precision=_HI) + b4   # layer 4 stays f32 in the kernel

    return mlp("mlp1"), mlp("mlp2")


if __name__ == "__main__":
    state_dim, action_dim, hidden_dim, batch = 16, 8, 32, 8

    key = jax.random.PRNGKey(0)
    key, ks, ka, kp = jax.random.split(key, 4)
    state = jax.random.normal(ks, (batch, state_dim), jnp.float32)
    action = jax.random.normal(ka, (batch, action_dim), jnp.float32)
    params = init_critic_params(kp, state_dim, action_dim, hidden_dim)

    q1, q2 = critic_forward(state, action, params)
    jax.block_until_ready((q1, q2))
    assert q1.shape == (batch, 1) and q2.shape == (batch, 1)

    # Tight check against a reference that emulates the kernel's bf16 rounding.
    e1, e2 = _emulated_reference(state, action, params)
    assert jnp.allclose(q1, e1, atol=1e-3, rtol=1e-3)
    assert jnp.allclose(q2, e2, atol=1e-3, rtol=1e-3)

    # Loose check against the exact f32 PyTorch-equivalent math.
    r1, r2 = _reference_forward(state, action, params)
    assert jnp.allclose(q1, r1, atol=5e-2, rtol=5e-2)
    assert jnp.allclose(q2, r2, atol=5e-2, rtol=5e-2)

    print("KERNEL_OK")
</pallas_src>

<mosaic_0001>
module attributes {stable_mosaic.version = 11 : i64} {
  func.func @_critic_kernel(%arg0: i32, %arg1: memref<8x16xbf16, #tpu.memory_space<vmem>>, %arg2: memref<8x8xbf16, #tpu.memory_space<vmem>>, %arg3: memref<24x256xbf16, #tpu.memory_space<vmem>>, %arg4: memref<512x128xbf16, #tpu.memory_space<vmem>>, %arg5: memref<8x256xf32, #tpu.memory_space<vmem>>, %arg6: memref<8x2xf32, #tpu.memory_space<vmem>>) attributes {dimension_semantics = [#tpu.dimension_semantics<parallel>], iteration_bounds = array<i64: 1>, scalar_prefetch = 0 : i64, scratch_operands = 0 : i64, tpu.core_type = #tpu.core_type<tc>, window_params = [{transform_indices = @transform_0, window_bounds = array<i64: 8, 16>}, {transform_indices = @transform_1, window_bounds = array<i64: 8, 8>}, {pipeline_mode = #tpu.pipeline_mode<synchronous>, transform_indices = @transform_2, window_bounds = array<i64: 24, 256>}, {pipeline_mode = #tpu.pipeline_mode<synchronous>, transform_indices = @transform_3, window_bounds = array<i64: 512, 128>}, {pipeline_mode = #tpu.pipeline_mode<synchronous>, transform_indices = @transform_4, window_bounds = array<i64: 8, 256>}, {transform_indices = @transform_5, window_bounds = array<i64: 8, 2>}]} {
    %c0 = arith.constant 0 : index
    %c0_0 = arith.constant 0 : index
    %0 = vector.load %arg1[%c0, %c0_0] : memref<8x16xbf16, #tpu.memory_space<vmem>>, vector<8x16xbf16>
    %c0_1 = arith.constant 0 : index
    %c0_2 = arith.constant 0 : index
    %1 = vector.load %arg3[%c0_1, %c0_2] : memref<24x256xbf16, #tpu.memory_space<vmem>>, vector<16x256xbf16>
    %cst = arith.constant dense<0.000000e+00> : vector<8x256xf32>
    %2 = tpu.matmul %0, %1, %cst {dimension_numbers = #tpu.dot_dimension_numbers<[1], [0], [0], [1], [0, 0, 1, 1], [], []>} : vector<8x16xbf16>, vector<16x256xbf16>, vector<8x256xf32> -> vector<8x256xf32>
    %c0_3 = arith.constant 0 : index
    %c0_4 = arith.constant 0 : index
    %3 = vector.load %arg2[%c0_3, %c0_4] : memref<8x8xbf16, #tpu.memory_space<vmem>>, vector<8x8xbf16>
    %c16 = arith.constant 16 : index
    %c0_5 = arith.constant 0 : index
    %4 = vector.load %arg3[%c16, %c0_5] : memref<24x256xbf16, #tpu.memory_space<vmem>>, vector<8x256xbf16>
    %cst_6 = arith.constant dense<0.000000e+00> : vector<8x256xf32>
    %5 = tpu.matmul %3, %4, %cst_6 {dimension_numbers = #tpu.dot_dimension_numbers<[1], [0], [0], [1], [0, 0, 1, 1], [], []>} : vector<8x8xbf16>, vector<8x256xbf16>, vector<8x256xf32> -> vector<8x256xf32>
    %6 = arith.addf %2, %5 : vector<8x256xf32>
    %c0_7 = arith.constant 0 : index
    %c0_8 = arith.constant 0 : index
    %7 = vector.load %arg5[%c0_7, %c0_8] : memref<8x256xf32, #tpu.memory_space<vmem>>, vector<1x256xf32>
    %8 = vector.broadcast %7 : vector<1x256xf32> to vector<8x256xf32>
    %9 = arith.addf %6, %8 : vector<8x256xf32>
    %cst_9 = arith.constant 0.000000e+00 : f32
    %10 = vector.broadcast %cst_9 : f32 to vector<8x256xf32>
    %11 = arith.maximumf %9, %10 : vector<8x256xf32>
    %12 = vector.extract_strided_slice %11 {offsets = [0, 0], sizes = [8, 128], strides = [1, 1]} : vector<8x256xf32> to vector<8x128xf32>
    %c0_10 = arith.constant 0 : index
    %c0_11 = arith.constant 0 : index
    %13 = vector.load %arg4[%c0_10, %c0_11] : memref<512x128xbf16, #tpu.memory_space<vmem>>, vector<128x128xbf16>
    %c1 = arith.constant 1 : index
    %c0_12 = arith.constant 0 : index
    %14 = vector.load %arg5[%c1, %c0_12] : memref<8x256xf32, #tpu.memory_space<vmem>>, vector<1x128xf32>
    %15 = arith.truncf %12 : vector<8x128xf32> to vector<8x128xbf16>
    %cst_13 = arith.constant dense<0.000000e+00> : vector<8x128xf32>
    %16 = tpu.matmul %15, %13, %cst_13 {dimension_numbers = #tpu.dot_dimension_numbers<[1], [0], [0], [1], [0, 0, 1, 1], [], []>} : vector<8x128xbf16>, vector<128x128xbf16>, vector<8x128xf32> -> vector<8x128xf32>
    %17 = vector.broadcast %14 : vector<1x128xf32> to vector<8x128xf32>
    %18 = arith.addf %16, %17 : vector<8x128xf32>
    %cst_14 = arith.constant 0.000000e+00 : f32
    %19 = vector.broadcast %cst_14 : f32 to vector<8x128xf32>
    %20 = arith.maximumf %18, %19 : vector<8x128xf32>
    %c256 = arith.constant 256 : index
    %c0_15 = arith.constant 0 : index
    %21 = vector.load %arg4[%c256, %c0_15] : memref<512x128xbf16, #tpu.memory_space<vmem>>, vector<128x128xbf16>
    %c2 = arith.constant 2 : index
    %c0_16 = arith.constant 0 : index
    %22 = vector.load %arg5[%c2, %c0_16] : memref<8x256xf32, #tpu.memory_space<vmem>>, vector<1x128xf32>
    %23 = arith.truncf %20 : vector<8x128xf32> to vector<8x128xbf16>
    %cst_17 = arith.constant dense<0.000000e+00> : vector<8x128xf32>
    %24 = tpu.matmul %23, %21, %cst_17 {dimension_numbers = #tpu.dot_dimension_numbers<[1], [0], [0], [1], [0, 0, 1, 1], [], []>} : vector<8x128xbf16>, vector<128x128xbf16>, vector<8x128xf32> -> vector<8x128xf32>
    %25 = vector.broadcast %22 : vector<1x128xf32> to vector<8x128xf32>
    %26 = arith.addf %24, %25 : vector<8x128xf32>
    %cst_18 = arith.constant 0.000000e+00 : f32
    %27 = vector.broadcast %cst_18 : f32 to vector<8x128xf32>
    %28 = arith.maximumf %26, %27 : vector<8x128xf32>
    %c3 = arith.constant 3 : index
    %c0_19 = arith.constant 0 : index
    %29 = vector.load %arg5[%c3, %c0_19] : memref<8x256xf32, #tpu.memory_space<vmem>>, vector<1x128xf32>
    %c4 = arith.constant 4 : index
    %c0_20 = arith.constant 0 : index
    %30 = vector.load %arg5[%c4, %c0_20] : memref<8x256xf32, #tpu.memory_space<vmem>>, vector<1x1xf32>
    %31 = vector.broadcast %29 : vector<1x128xf32> to vector<8x128xf32>
    %32 = arith.mulf %28, %31 : vector<8x128xf32>
    %cst_21 = arith.constant dense<0.000000e+00> : vector<8xf32>
    %33 = vector.multi_reduction <add>, %32, %cst_21 [1] : vector<8x128xf32> to vector<8xf32>
    %34 = vector.shape_cast %33 : vector<8xf32> to vector<8x1xf32>
    %35 = vector.broadcast %30 : vector<1x1xf32> to vector<8x1xf32>
    %36 = arith.addf %34, %35 : vector<8x1xf32>
    %37 = vector.extract_strided_slice %11 {offsets = [0, 128], sizes = [8, 128], strides = [1, 1]} : vector<8x256xf32> to vector<8x128xf32>
    %c128 = arith.constant 128 : index
    %c0_22 = arith.constant 0 : index
    %38 = vector.load %arg4[%c128, %c0_22] : memref<512x128xbf16, #tpu.memory_space<vmem>>, vector<128x128xbf16>
    %c1_23 = arith.constant 1 : index
    %c128_24 = arith.constant 128 : index
    %39 = vector.load %arg5[%c1_23, %c128_24] : memref<8x256xf32, #tpu.memory_space<vmem>>, vector<1x128xf32>
    %40 = arith.truncf %37 : vector<8x128xf32> to vector<8x128xbf16>
    %cst_25 = arith.constant dense<0.000000e+00> : vector<8x128xf32>
    %41 = tpu.matmul %40, %38, %cst_25 {dimension_numbers = #tpu.dot_dimension_numbers<[1], [0], [0], [1], [0, 0, 1, 1], [], []>} : vector<8x128xbf16>, vector<128x128xbf16>, vector<8x128xf32> -> vector<8x128xf32>
    %42 = vector.broadcast %39 : vector<1x128xf32> to vector<8x128xf32>
    %43 = arith.addf %41, %42 : vector<8x128xf32>
    %cst_26 = arith.constant 0.000000e+00 : f32
    %44 = vector.broadcast %cst_26 : f32 to vector<8x128xf32>
    %45 = arith.maximumf %43, %44 : vector<8x128xf32>
    %c384 = arith.constant 384 : index
    %c0_27 = arith.constant 0 : index
    %46 = vector.load %arg4[%c384, %c0_27] : memref<512x128xbf16, #tpu.memory_space<vmem>>, vector<128x128xbf16>
    %c2_28 = arith.constant 2 : index
    %c128_29 = arith.constant 128 : index
    %47 = vector.load %arg5[%c2_28, %c128_29] : memref<8x256xf32, #tpu.memory_space<vmem>>, vector<1x128xf32>
    %48 = arith.truncf %45 : vector<8x128xf32> to vector<8x128xbf16>
    %cst_30 = arith.constant dense<0.000000e+00> : vector<8x128xf32>
    %49 = tpu.matmul %48, %46, %cst_30 {dimension_numbers = #tpu.dot_dimension_numbers<[1], [0], [0], [1], [0, 0, 1, 1], [], []>} : vector<8x128xbf16>, vector<128x128xbf16>, vector<8x128xf32> -> vector<8x128xf32>
    %50 = vector.broadcast %47 : vector<1x128xf32> to vector<8x128xf32>
    %51 = arith.addf %49, %50 : vector<8x128xf32>
    %cst_31 = arith.constant 0.000000e+00 : f32
    %52 = vector.broadcast %cst_31 : f32 to vector<8x128xf32>
    %53 = arith.maximumf %51, %52 : vector<8x128xf32>
    %c3_32 = arith.constant 3 : index
    %c128_33 = arith.constant 128 : index
    %54 = vector.load %arg5[%c3_32, %c128_33] : memref<8x256xf32, #tpu.memory_space<vmem>>, vector<1x128xf32>
    %c4_34 = arith.constant 4 : index
    %c1_35 = arith.constant 1 : index
    %55 = vector.load %arg5[%c4_34, %c1_35] : memref<8x256xf32, #tpu.memory_space<vmem>>, vector<1x1xf32>
    %56 = vector.broadcast %54 : vector<1x128xf32> to vector<8x128xf32>
    %57 = arith.mulf %53, %56 : vector<8x128xf32>
    %cst_36 = arith.constant dense<0.000000e+00> : vector<8xf32>
    %58 = vector.multi_reduction <add>, %57, %cst_36 [1] : vector<8x128xf32> to vector<8xf32>
    %59 = vector.shape_cast %58 : vector<8xf32> to vector<8x1xf32>
    %60 = vector.broadcast %55 : vector<1x1xf32> to vector<8x1xf32>
    %61 = arith.addf %59, %60 : vector<8x1xf32>
    %62 = tpu.concatenate %36, %61 in 1 : vector<8x1xf32>, vector<8x1xf32> -> vector<8x2xf32>
    %c0_37 = arith.constant 0 : index
    %c0_38 = arith.constant 0 : index
    %63 = vector.load %arg6[%c0_37, %c0_38] : memref<8x2xf32, #tpu.memory_space<vmem>>, vector<8x2xf32>
    tpu.vector_store %arg6[%c0_37, %c0_38], %62 {strides = array<i32>} : memref<8x2xf32, #tpu.memory_space<vmem>>, vector<8x2xf32>,
    return
  }
  func.func @transform_0(%arg0: i32) -> (i32, i32) {
    %c0_i32 = arith.constant 0 : i32
    %c0_i32_0 = arith.constant 0 : i32
    return %arg0, %c0_i32 : i32, i32
  }
  func.func @transform_1(%arg0: i32) -> (i32, i32) {
    %c0_i32 = arith.constant 0 : i32
    %c0_i32_0 = arith.constant 0 : i32
    return %arg0, %c0_i32 : i32, i32
  }
  func.func @transform_2(%arg0: i32) -> (i32, i32) {
    %c0_i32 = arith.constant 0 : i32
    %c0_i32_0 = arith.constant 0 : i32
    %c0_i32_1 = arith.constant 0 : i32
    return %c0_i32, %c0_i32_0 : i32, i32
  }
  func.func @transform_3(%arg0: i32) -> (i32, i32) {
    %c0_i32 = arith.constant 0 : i32
    %c0_i32_0 = arith.constant 0 : i32
    %c0_i32_1 = arith.constant 0 : i32
    return %c0_i32, %c0_i32_0 : i32, i32
  }
  func.func @transform_4(%arg0: i32) -> (i32, i32) {
    %c0_i32 = arith.constant 0 : i32
    %c0_i32_0 = arith.constant 0 : i32
    %c0_i32_1 = arith.constant 0 : i32
    return %c0_i32, %c0_i32_0 : i32, i32
  }
  func.func @transform_5(%arg0: i32) -> (i32, i32) {
    %c0_i32 = arith.constant 0 : i32
    %c0_i32_0 = arith.constant 0 : i32
    return %arg0, %c0_i32 : i32, i32
  }
}

module attributes {stable_mosaic.version = 11 : i64} {
  func.func @_critic_kernel(%arg0: i32, %arg1: memref<8x16xbf16, #tpu.memory_space<vmem>>, %arg2: memref<8x8xbf16, #tpu.memory_space<vmem>>, %arg3: memref<24x256xbf16, #tpu.memory_space<vmem>>, %arg4: memref<512x128xbf16, #tpu.memory_space<vmem>>, %arg5: memref<8x256xf32, #tpu.memory_space<vmem>>, %arg6: memref<8x2xf32, #tpu.memory_space<vmem>>) attributes {dimension_semantics = [#tpu.dimension_semantics<parallel>], iteration_bounds = array<i64: 1>, scalar_prefetch = 0 : i64, scratch_operands = 0 : i64, tpu.core_type = #tpu.core_type<tc>, window_params = [{transform_indices = @transform_0, window_bounds = array<i64: 8, 16>}, {transform_indices = @transform_1, window_bounds = array<i64: 8, 8>}, {pipeline_mode = #tpu.pipeline_mode<synchronous>, transform_indices = @transform_2, window_bounds = array<i64: 24, 256>}, {pipeline_mode = #tpu.pipeline_mode<synchronous>, transform_indices = @transform_3, window_bounds = array<i64: 512, 128>}, {pipeline_mode = #tpu.pipeline_mode<synchronous>, transform_indices = @transform_4, window_bounds = array<i64: 8, 256>}, {transform_indices = @transform_5, window_bounds = array<i64: 8, 2>}]} {
    %c0 = arith.constant 0 : index
    %c0_0 = arith.constant 0 : index
    %0 = vector.load %arg1[%c0, %c0_0] : memref<8x16xbf16, #tpu.memory_space<vmem>>, vector<8x16xbf16>
    %c0_1 = arith.constant 0 : index
    %c0_2 = arith.constant 0 : index
    %1 = vector.load %arg3[%c0_1, %c0_2] : memref<24x256xbf16, #tpu.memory_space<vmem>>, vector<16x256xbf16>
    %cst = arith.constant dense<0.000000e+00> : vector<8x256xf32>
    %2 = tpu.matmul %0, %1, %cst {dimension_numbers = #tpu.dot_dimension_numbers<[1], [0], [0], [1], [0, 0, 1, 1], [], []>} : vector<8x16xbf16>, vector<16x256xbf16>, vector<8x256xf32> -> vector<8x256xf32>
    %c0_3 = arith.constant 0 : index
    %c0_4 = arith.constant 0 : index
    %3 = vector.load %arg2[%c0_3, %c0_4] : memref<8x8xbf16, #tpu.memory_space<vmem>>, vector<8x8xbf16>
    %c16 = arith.constant 16 : index
    %c0_5 = arith.constant 0 : index
    %4 = vector.load %arg3[%c16, %c0_5] : memref<24x256xbf16, #tpu.memory_space<vmem>>, vector<8x256xbf16>
    %cst_6 = arith.constant dense<0.000000e+00> : vector<8x256xf32>
    %5 = tpu.matmul %3, %4, %cst_6 {dimension_numbers = #tpu.dot_dimension_numbers<[1], [0], [0], [1], [0, 0, 1, 1], [], []>} : vector<8x8xbf16>, vector<8x256xbf16>, vector<8x256xf32> -> vector<8x256xf32>
    %6 = arith.addf %2, %5 : vector<8x256xf32>
    %c0_7 = arith.constant 0 : index
    %c0_8 = arith.constant 0 : index
    %7 = vector.load %arg5[%c0_7, %c0_8] : memref<8x256xf32, #tpu.memory_space<vmem>>, vector<1x256xf32>
    %8 = vector.broadcast %7 : vector<1x256xf32> to vector<8x256xf32>
    %9 = arith.addf %6, %8 : vector<8x256xf32>
    %cst_9 = arith.constant 0.000000e+00 : f32
    %10 = vector.broadcast %cst_9 : f32 to vector<8x256xf32>
    %11 = arith.maximumf %9, %10 : vector<8x256xf32>
    %12 = vector.extract_strided_slice %11 {offsets = [0, 0], sizes = [8, 128], strides = [1, 1]} : vector<8x256xf32> to vector<8x128xf32>
    %c0_10 = arith.constant 0 : index
    %c0_11 = arith.constant 0 : index
    %13 = vector.load %arg4[%c0_10, %c0_11] : memref<512x128xbf16, #tpu.memory_space<vmem>>, vector<128x128xbf16>
    %c1 = arith.constant 1 : index
    %c0_12 = arith.constant 0 : index
    %14 = vector.load %arg5[%c1, %c0_12] : memref<8x256xf32, #tpu.memory_space<vmem>>, vector<1x128xf32>
    %15 = arith.truncf %12 : vector<8x128xf32> to vector<8x128xbf16>
    %cst_13 = arith.constant dense<0.000000e+00> : vector<8x128xf32>
    %16 = tpu.matmul %15, %13, %cst_13 {dimension_numbers = #tpu.dot_dimension_numbers<[1], [0], [0], [1], [0, 0, 1, 1], [], []>} : vector<8x128xbf16>, vector<128x128xbf16>, vector<8x128xf32> -> vector<8x128xf32>
    %17 = vector.broadcast %14 : vector<1x128xf32> to vector<8x128xf32>
    %18 = arith.addf %16, %17 : vector<8x128xf32>
    %cst_14 = arith.constant 0.000000e+00 : f32
    %19 = vector.broadcast %cst_14 : f32 to vector<8x128xf32>
    %20 = arith.maximumf %18, %19 : vector<8x128xf32>
    %c256 = arith.constant 256 : index
    %c0_15 = arith.constant 0 : index
    %21 = vector.load %arg4[%c256, %c0_15] : memref<512x128xbf16, #tpu.memory_space<vmem>>, vector<128x128xbf16>
    %c2 = arith.constant 2 : index
    %c0_16 = arith.constant 0 : index
    %22 = vector.load %arg5[%c2, %c0_16] : memref<8x256xf32, #tpu.memory_space<vmem>>, vector<1x128xf32>
    %23 = arith.truncf %20 : vector<8x128xf32> to vector<8x128xbf16>
    %cst_17 = arith.constant dense<0.000000e+00> : vector<8x128xf32>
    %24 = tpu.matmul %23, %21, %cst_17 {dimension_numbers = #tpu.dot_dimension_numbers<[1], [0], [0], [1], [0, 0, 1, 1], [], []>} : vector<8x128xbf16>, vector<128x128xbf16>, vector<8x128xf32> -> vector<8x128xf32>
    %25 = vector.broadcast %22 : vector<1x128xf32> to vector<8x128xf32>
    %26 = arith.addf %24, %25 : vector<8x128xf32>
    %cst_18 = arith.constant 0.000000e+00 : f32
    %27 = vector.broadcast %cst_18 : f32 to vector<8x128xf32>
    %28 = arith.maximumf %26, %27 : vector<8x128xf32>
    %c3 = arith.constant 3 : index
    %c0_19 = arith.constant 0 : index
    %29 = vector.load %arg5[%c3, %c0_19] : memref<8x256xf32, #tpu.memory_space<vmem>>, vector<1x128xf32>
    %c4 = arith.constant 4 : index
    %c0_20 = arith.constant 0 : index
    %30 = vector.load %arg5[%c4, %c0_20] : memref<8x256xf32, #tpu.memory_space<vmem>>, vector<1x1xf32>
    %31 = vector.broadcast %29 : vector<1x128xf32> to vector<8x128xf32>
    %32 = arith.mulf %28, %31 : vector<8x128xf32>
    %cst_21 = arith.constant dense<0.000000e+00> : vector<8xf32>
    %33 = vector.multi_reduction <add>, %32, %cst_21 [1] : vector<8x128xf32> to vector<8xf32>
    %34 = vector.shape_cast %33 : vector<8xf32> to vector<8x1xf32>
    %35 = vector.broadcast %30 : vector<1x1xf32> to vector<8x1xf32>
    %36 = arith.addf %34, %35 : vector<8x1xf32>
    %37 = vector.extract_strided_slice %11 {offsets = [0, 128], sizes = [8, 128], strides = [1, 1]} : vector<8x256xf32> to vector<8x128xf32>
    %c128 = arith.constant 128 : index
    %c0_22 = arith.constant 0 : index
    %38 = vector.load %arg4[%c128, %c0_22] : memref<512x128xbf16, #tpu.memory_space<vmem>>, vector<128x128xbf16>
    %c1_23 = arith.constant 1 : index
    %c128_24 = arith.constant 128 : index
    %39 = vector.load %arg5[%c1_23, %c128_24] : memref<8x256xf32, #tpu.memory_space<vmem>>, vector<1x128xf32>
    %40 = arith.truncf %37 : vector<8x128xf32> to vector<8x128xbf16>
    %cst_25 = arith.constant dense<0.000000e+00> : vector<8x128xf32>
    %41 = tpu.matmul %40, %38, %cst_25 {dimension_numbers = #tpu.dot_dimension_numbers<[1], [0], [0], [1], [0, 0, 1, 1], [], []>} : vector<8x128xbf16>, vector<128x128xbf16>, vector<8x128xf32> -> vector<8x128xf32>
    %42 = vector.broadcast %39 : vector<1x128xf32> to vector<8x128xf32>
    %43 = arith.addf %41, %42 : vector<8x128xf32>
    %cst_26 = arith.constant 0.000000e+00 : f32
    %44 = vector.broadcast %cst_26 : f32 to vector<8x128xf32>
    %45 = arith.maximumf %43, %44 : vector<8x128xf32>
    %c384 = arith.constant 384 : index
    %c0_27 = arith.constant 0 : index
    %46 = vector.load %arg4[%c384, %c0_27] : memref<512x128xbf16, #tpu.memory_space<vmem>>, vector<128x128xbf16>
    %c2_28 = arith.constant 2 : index
    %c128_29 = arith.constant 128 : index
    %47 = vector.load %arg5[%c2_28, %c128_29] : memref<8x256xf32, #tpu.memory_space<vmem>>, vector<1x128xf32>
    %48 = arith.truncf %45 : vector<8x128xf32> to vector<8x128xbf16>
    %cst_30 = arith.constant dense<0.000000e+00> : vector<8x128xf32>
    %49 = tpu.matmul %48, %46, %cst_30 {dimension_numbers = #tpu.dot_dimension_numbers<[1], [0], [0], [1], [0, 0, 1, 1], [], []>} : vector<8x128xbf16>, vector<128x128xbf16>, vector<8x128xf32> -> vector<8x128xf32>
    %50 = vector.broadcast %47 : vector<1x128xf32> to vector<8x128xf32>
    %51 = arith.addf %49, %50 : vector<8x128xf32>
    %cst_31 = arith.constant 0.000000e+00 : f32
    %52 = vector.broadcast %cst_31 : f32 to vector<8x128xf32>
    %53 = arith.maximumf %51, %52 : vector<8x128xf32>
    %c3_32 = arith.constant 3 : index
    %c128_33 = arith.constant 128 : index
    %54 = vector.load %arg5[%c3_32, %c128_33] : memref<8x256xf32, #tpu.memory_space<vmem>>, vector<1x128xf32>
    %c4_34 = arith.constant 4 : index
    %c1_35 = arith.constant 1 : index
    %55 = vector.load %arg5[%c4_34, %c1_35] : memref<8x256xf32, #tpu.memory_space<vmem>>, vector<1x1xf32>
    %56 = vector.broadcast %54 : vector<1x128xf32> to vector<8x128xf32>
    %57 = arith.mulf %53, %56 : vector<8x128xf32>
    %cst_36 = arith.constant dense<0.000000e+00> : vector<8xf32>
    %58 = vector.multi_reduction <add>, %57, %cst_36 [1] : vector<8x128xf32> to vector<8xf32>
    %59 = vector.shape_cast %58 : vector<8xf32> to vector<8x1xf32>
    %60 = vector.broadcast %55 : vector<1x1xf32> to vector<8x1xf32>
    %61 = arith.addf %59, %60 : vector<8x1xf32>
    %62 = tpu.concatenate %36, %61 in 1 : vector<8x1xf32>, vector<8x1xf32> -> vector<8x2xf32>
    %c0_37 = arith.constant 0 : index
    %c0_38 = arith.constant 0 : index
    %63 = vector.load %arg6[%c0_37, %c0_38] : memref<8x2xf32, #tpu.memory_space<vmem>>, vector<8x2xf32>
    tpu.vector_store %arg6[%c0_37, %c0_38], %62 {strides = array<i32>} : memref<8x2xf32, #tpu.memory_space<vmem>>, vector<8x2xf32>,
    return
  }
  func.func @transform_0(%arg0: i32) -> (i32, i32) {
    %c0_i32 = arith.constant 0 : i32
    %c0_i32_0 = arith.constant 0 : i32
    return %arg0, %c0_i32 : i32, i32
  }
  func.func @transform_1(%arg0: i32) -> (i32, i32) {
    %c0_i32 = arith.constant 0 : i32
    %c0_i32_0 = arith.constant 0 : i32
    return %arg0, %c0_i32 : i32, i32
  }
  func.func @transform_2(%arg0: i32) -> (i32, i32) {
    %c0_i32 = arith.constant 0 : i32
    %c0_i32_0 = arith.constant 0 : i32
    %c0_i32_1 = arith.constant 0 : i32
    return %c0_i32, %c0_i32_0 : i32, i32
  }
  func.func @transform_3(%arg0: i32) -> (i32, i32) {
    %c0_i32 = arith.constant 0 : i32
    %c0_i32_0 = arith.constant 0 : i32
    %c0_i32_1 = arith.constant 0 : i32
    return %c0_i32, %c0_i32_0 : i32, i32
  }
  func.func @transform_4(%arg0: i32) -> (i32, i32) {
    %c0_i32 = arith.constant 0 : i32
    %c0_i32_0 = arith.constant 0 : i32
    %c0_i32_1 = arith.constant 0 : i32
    return %c0_i32, %c0_i32_0 : i32, i32
  }
  func.func @transform_5(%arg0: i32) -> (i32, i32) {
    %c0_i32 = arith.constant 0 : i32
    %c0_i32_0 = arith.constant 0 : i32
    return %arg0, %c0_i32 : i32, i32
  }
}

</mosaic_0001>

<bundles_post_ra>
// kernel: tpu_custom_call.1
= control target key start
LH: loop header
LB: loop body
LE: loop exit
PB: predicated region body
PF: predicated region fallthrough
CT: control target
= control target key end

     0   :  { %10 = vsyncpa [#allocation3], 0  ;;  %s898_s0 = inlined_call_operand.hbm [shape: bf16[8,16], index: 0, kind: input, shape index: {}]   ;;  %s899_s1 = inlined_call_operand.hbm [shape: bf16[8,8], index: 1, kind: input, shape index: {}]   ;;  %s900_s2 = inlined_call_operand.hbm [shape: bf16[24,256], index: 2, kind: input, shape index: {}]   ;;  %s901_s3 = inlined_call_operand.hbm [shape: bf16[512,128], index: 3, kind: input, shape index: {}]   ;;  %s902_s4 = inlined_call_operand.hbm [shape: f32[8,256], index: 4, kind: input, shape index: {}]   ;;  %s903_s5 = inlined_call_operand.vmem [shape: f32[8,2], index: 5, kind: output, shape index: {}]  }
   0x1   :  { %11 = vsyncpa [#allocation5], 0  ;;  %s29_s20 = sshll.u32 %s899_s1, 4  ;;  %s30_s20 = int_to_ptr.hbm [resolvable:$true] %s29_s20 }
   0x2   :  { %12 = vsyncpa [#allocation8], 0  ;;  %s841_s21 = smov [#allocation4]   ;;  %s52_s25 = sshll.u32 %s901_s3, 4  ;;  %s53_s25 = int_to_ptr.hbm [resolvable:$true] %s52_s25 }
   0x3   :  { %s31_s22 = sshll.u32 %s841_s21, 4  ;;  %s842_s26 = smov [#allocation7]   ;;  %s32_s22 = int_to_ptr.vmem [resolvable:$true] %s31_s22 }
   0x4   :  { %34 = dma.hbm_to_vmem [thread:$0]  %s30_s20, 64, %s32_s22, [#allocation5]  }
   0x5   :  { %s54_s27 = sshll.u32 %s842_s26, 4  ;;  %s843_s28 = smov 64   ;;  %s55_s27 = int_to_ptr.vmem [resolvable:$true] %s54_s27 }
   0x6   :  { %s844_s29 = smov 4   ;;  %s18_s1 = sshll.u32 %s898_s0, 4  ;;  %s19_s1 = int_to_ptr.hbm [resolvable:$true] %s18_s1 }
   0x7   :  { %60 = dma.hbm_to_vmem [thread:$0]  %s53_s25, 4096, %s55_s27, [#allocation8], %s843_s28, %s843_s28, %s844_s29  }
   0x8   :  { %s845_s7 = smov [#allocation2]   ;;  %s39_s3 = sshll.u32 %s900_s2, 4  ;;  %s40_s3 = int_to_ptr.hbm [resolvable:$true] %s39_s3 }
   0x9   :  { %s20_s8 = sshll.u32 %s845_s7, 4  ;;  %s846_s11 = smov [#allocation6]   ;;  %s21_s8 = int_to_ptr.vmem [resolvable:$true] %s20_s8 }
   0xa   :  { %23 = dma.hbm_to_vmem [thread:$0]  %s19_s1, 64, %s21_s8, [#allocation3]  }
   0xb   :  { %s41_s12 = sshll.u32 %s846_s11, 4  ;;  %s847_s13 = smov 128   ;;  %s42_s12 = int_to_ptr.vmem [resolvable:$true] %s41_s12 }
   0xc   :  { %s848_s14 = smov 8   ;;  %s66_s0 = sshll.u32 %s902_s4, 4  ;;  %s67_s0 = int_to_ptr.hbm [resolvable:$true] %s66_s0 }
   0xd   :  { %47 = dma.hbm_to_vmem [thread:$0]  %s40_s3, 384, %s42_s12, [#allocation5], %s847_s13, %s847_s13, %s848_s14  }
   0xe   :  { %s849_s17 = smov [#allocation9]  }
   0xf   :  { %s68_s18 = sshll.u32 %s849_s17, 4  ;;  %s69_s18 = int_to_ptr.vmem [resolvable:$true] %s68_s18 }
  0x10   :  { %71 = dma.hbm_to_vmem [thread:$0]  %s67_s0, 256, %s69_s18, [#allocation8]  }
  0x11   :  { %835 = dma.done.wait [#allocation3], 64  }
  0x12   :  { %836 = vsyncadd [#allocation3], 4294967232 }
  0x13   :  { %837 = dma.done.wait [#allocation5], 448  }
  0x14   :  { %838 = vsyncadd [#allocation5], 4294966848 }
  0x15   :  { %839 = dma.done.wait [#allocation8], 4352  }
  0x16   :  { %840 = vsyncadd [#allocation8], 4294962944  ;;  %v536_v0 = vld [vmem:[#allocation6] sm:$0xf]  ;;  %v673_v1 = vld [vmem:[#allocation6 + $0x4] sm:$0xf0] }
  0x17   :  { %v672_v2 = vld [vmem:[#allocation6 + $0x4] sm:$0xf]  ;;  %v537_v3 = vor.u32 %v673_v1, %v536_v0  ;;  %v538_v4 = vld [vmem:[#allocation6 + $0x8] sm:$0xf0]  ;;  %v97_v5 = vld [vmem:[#allocation6 + $0x10] sm:$0xff]  ;;  %vm107_vm0 = vcmask 1043456  }
  0x18   :  { %v541_v6 = vor.u32 %v672_v2, %v538_v4  ;;  %v99_v7 = vunpack.c.l.b16 %v97_v5  ;;  %v100_v8 = vunpack.c.h.b16 %v97_v5  ;;  %v697_v9 = vld [vmem:[#allocation7 + $0x78] sm:$0xff]  ;;  %v93_v10 = vld [vmem:[#allocation2] sm:$0xf]  ;;  %vm150_vm1 = vcmask 130048   ;;  %v696_v14 = vld [vmem:[#allocation7 + $0x70] sm:$0xff] }
  0x19   :  { %161 = vmatpush.bf16.msra.mxu2 %v537_v3  ;;  %v681_v13 = vld [vmem:[#allocation7 + $0x38] sm:$0xff]  ;;  %v96_v17 = vld [vmem:[#allocation4] sm:$0xf]  ;;  %vm103_vm2 = vcmask 64512   ;;  %v680_v18 = vld [vmem:[#allocation7 + $0x30] sm:$0xff]  ;;  %vm521_vm3 = vcmask 7168  }
  0x1a   :  { %174 = vmatpush.bf16.msra.mxu3 %v541_v6  ;;  %v101_v11 = vpack.c.b16 %v99_v7, %v99_v7  ;;  %v102_v12 = vpack.c.b16 %v100_v8, %v100_v8  ;;  %v695_v19 = vld [vmem:[#allocation7 + $0x68] sm:$0xff]  ;;  %v694_v21 = vld [vmem:[#allocation7 + $0x60] sm:$0xff]  ;;  %v693_v23 = vld [vmem:[#allocation7 + $0x58] sm:$0xff]  ;;  %vm523_vm4 = vcmask 15360  }
  0x1b   :  { %v679_v20 = vld [vmem:[#allocation7 + $0x28] sm:$0xff]  ;;  %v678_v22 = vld [vmem:[#allocation7 + $0x20] sm:$0xff]  ;;  %v677_v24 = vld [vmem:[#allocation7 + $0x18] sm:$0xff] }
  0x1c   :  { %v109_v15 = vsel %vm107_vm0, %v101_v11, 0  ;;  %v112_v16 = vsel %vm107_vm0, %v102_v12, 0  ;;  %542 = vmatmul.msk.bf16.vlgmr.msra.gmra.mxu2 %vm150_vm1, %v93_v10  ;;  %v676_v25 = vld [vmem:[#allocation7 + $0x10] sm:$0xff]  ;;  %v675_v27 = vld [vmem:[#allocation7 + $0x8] sm:$0xff]  ;;  %v674_v29 = vld [vmem:[#allocation7] sm:$0xff] }
  0x1d   :  { %422 = vmatpush.bf16.msrb.mxu2 %v697_v9  ;;  %121 = vmatpush.bf16.msra.mxu0 %v109_v15  ;;  %v692_v26 = vld [vmem:[#allocation7 + $0x50] sm:$0xff]  ;;  %v691_v28 = vld [vmem:[#allocation7 + $0x48] sm:$0xff]  ;;  %v690_v30 = vld [vmem:[#allocation7 + $0x40] sm:$0xff] }
  0x1e   :  { %134 = vmatpush.bf16.msra.mxu1 %v112_v16  ;;  %543 = vmatmul.msk.bf16.vlgmr.msra.gmra.mxu3 %vm150_vm1, %v93_v10  ;;  %v689_v31 = vld [vmem:[#allocation7 + $0xb8] sm:$0xff]  ;;  %v688_v33 = vld [vmem:[#allocation7 + $0xb0] sm:$0xff]  ;;  %v687_v35 = vld [vmem:[#allocation7 + $0xa8] sm:$0xff] }
  0x1f   :  { %v705_v32 = vld [vmem:[#allocation7 + $0xf8] sm:$0xff]  ;;  %v704_v34 = vld [vmem:[#allocation7 + $0xf0] sm:$0xff]  ;;  %v703_v36 = vld [vmem:[#allocation7 + $0xe8] sm:$0xff] }
  0x20   :  { %532 = vmatmul.msk.bf16.vlgmr.msra.gmra.mxu0 %vm103_vm2, %v96_v17  ;;  %502 = vmatpush.bf16.msrb.mxu3 %v705_v32  ;;  %v686_v37 = vld [vmem:[#allocation7 + $0xa0] sm:$0xff]  ;;  %v685_v39 = vld [vmem:[#allocation7 + $0x98] sm:$0xff]  ;;  %v684_v42 = vld [vmem:[#allocation7 + $0x90] sm:$0xff] }
  0x21   :  { %256 = vmatpush.bf16.msrb.mxu0 %v681_v13  ;;  %423 = vmatpush.bf16.msrb.mxu2 %v696_v14  ;;  %v702_v38 = vld [vmem:[#allocation7 + $0xe0] sm:$0xff]  ;;  %v701_v40 = vld [vmem:[#allocation7 + $0xd8] sm:$0xff]  ;;  %v683_v61 = vld [vmem:[#allocation7 + $0x88] sm:$0xff] }
  0x22   :  { %533 = vmatmul.msk.bf16.vlgmr.msra.gmra.mxu1 %vm103_vm2, %v96_v17  ;;  %v180_v41 = vld [vmem:[#allocation9] ss:$8 sm:$0x3]  ;;  %v700_v62 = vld [vmem:[#allocation7 + $0xd0] sm:$0xff]  ;;  %v206_v2 = vld [vmem:[#allocation9 + $0x1] ss:$0 sm:$0xff] }
  0x23   :  { %336 = vmatpush.bf16.msrb.mxu1 %v689_v31  ;;  %v182_v45 = vperm.slane %v180_v41, 0  ;;  %v183_v48 = vperm.slane %v180_v41, 1  ;;  %v682_v63 = vld [vmem:[#allocation7 + $0x80] sm:$0xff]  ;;  %v699_v0 = vld [vmem:[#allocation7 + $0xc8] sm:$0xff] }
  0x24   :  { %503 = vmatpush.bf16.msrb.mxu3 %v704_v34  ;;  %v698_v1 = vld [vmem:[#allocation7 + $0xc0] sm:$0xff]  ;;  %v372_v7 = vld [vmem:[#allocation9 + $0x9] ss:$0 sm:$0xff] }
  0x25   :  { %257 = vmatpush.bf16.msrb.mxu0 %v680_v18  ;;  %424 = vmatpush.bf16.msrb.mxu2 %v695_v19  ;;  %v286_v14 = vld [vmem:[#allocation9 + $0x2] ss:$0 sm:$0xff]  ;;  %v350_v17 = vld [vmem:[#allocation9 + $0x3] ss:$0 sm:$0xff] }
  0x27   :  { %337 = vmatpush.bf16.msrb.mxu1 %v688_v33 }
  0x28   :  { %504 = vmatpush.bf16.msrb.mxu3 %v703_v36 }
  0x29   :  { %258 = vmatpush.bf16.msrb.mxu0 %v679_v20  ;;  %425 = vmatpush.bf16.msrb.mxu2 %v694_v21  ;;  %v452_v21 = vld [vmem:[#allocation9 + $0xa] ss:$0 sm:$0xff] }
  0x2b   :  { %338 = vmatpush.bf16.msrb.mxu1 %v687_v35 }
  0x2c   :  { %505 = vmatpush.bf16.msrb.mxu3 %v702_v38 }
  0x2d   :  { %259 = vmatpush.bf16.msrb.mxu0 %v678_v22  ;;  %426 = vmatpush.bf16.msrb.mxu2 %v693_v23 }
  0x2f   :  { %339 = vmatpush.bf16.msrb.mxu1 %v686_v37 }
  0x30   :  { %506 = vmatpush.bf16.msrb.mxu3 %v701_v40 }
  0x31   :  { %260 = vmatpush.bf16.msrb.mxu0 %v677_v24  ;;  %427 = vmatpush.bf16.msrb.mxu2 %v692_v26  ;;  %v516_v24 = vld [vmem:[#allocation9 + $0xb] ss:$0 sm:$0xff] }
  0x33   :  { %340 = vmatpush.bf16.msrb.mxu1 %v685_v39 }
  0x34   :  { %507 = vmatpush.bf16.msrb.mxu3 %v700_v62 }
  0x35   :  { %261 = vmatpush.bf16.msrb.mxu0 %v676_v25  ;;  %428 = vmatpush.bf16.msrb.mxu2 %v691_v28 }
  0x37   :  { %341 = vmatpush.bf16.msrb.mxu1 %v684_v42 }
  0x38   :  { %508 = vmatpush.bf16.msrb.mxu3 %v699_v0 }
  0x39   :  { %262 = vmatpush.bf16.msrb.mxu0 %v675_v27  ;;  %429 = vmatpush.bf16.msrb.mxu2 %v690_v30 }
  0x3b   :  { %342 = vmatpush.bf16.msrb.mxu1 %v683_v61 }
  0x3c   :  { %509 = vmatpush.bf16.msrb.mxu3 %v698_v1 }
  0x3d   :  { %263 = vmatpush.bf16.msrb.mxu0 %v674_v29  ;;  %v351_v29 = vld [vmem:[#allocation9 + $0x4] ss:$0 sm:$0xff] }
  0x3f   :  { %343 = vmatpush.bf16.msrb.mxu1 %v682_v63 }
  0x9d   :  { %v123_v43 = vpop.f32.mrf.mxu0 }
  0x9f   :  { %v136_v44 = vpop.f32.mrf.mxu1  ;;  %v163_v46 = vpop.f32.mrf.mxu2 }
  0xa0   :  { %v164_v47 = vadd.f32 %v163_v46, %v123_v43 }
  0xa1   :  { %v176_v49 = vpop.f32.mrf.mxu3 }
  0xa2   :  { %v186_v50 = vadd.f32 %v182_v45, %v164_v47  ;;  %v177_v51 = vadd.f32 %v176_v49, %v136_v44 }
  0xa4   :  { %v188_v52 = vmax.f32 %v186_v50, 0.0  ;;  %v187_v53 = vadd.f32 %v183_v48, %v177_v51 }
  0xa5   :  { %v125_v54 = vpop.f32.mrf.mxu0 }
  0xa6   :  { %v207_v56 = vpack.c.bf16 %v188_v52, %v188_v52  ;;  %v189_v57 = vmax.f32 %v187_v53, 0.0 }
  0xa7   :  { %v138_v55 = vpop.f32.mrf.mxu1  ;;  %v165_v58 = vpop.f32.mrf.mxu2 }
  0xa8   :  { %v373_v59 = vpack.c.bf16 %v189_v57, %v189_v57  ;;  %264 = vmatmul.bf16.vlgmr.msrb.gmra.mxu0 %v207_v56 }
  0xa9   :  { %v178_v60 = vpop.f32.mrf.mxu3 }
  0xaa   :  { %430 = vmatmul.bf16.vlgmr.msrb.gmra.mxu2 %v373_v59 }
 0x125   :  { %v265_v3 = vpop.f32.mrf.mxu0 }
 0x126   :  { %v266_v4 = vadd.f32 %v265_v3, %v206_v2 }
 0x128   :  { %v269_v5 = vmax.f32 %v266_v4, 0.0 }
 0x12a   :  { %v287_v6 = vpack.c.bf16 %v269_v5, %v269_v5 }
 0x12c   :  { %344 = vmatmul.bf16.vlgmr.msrb.gmra.mxu1 %v287_v6 }
 0x12d   :  { %v431_v8 = vpop.f32.mrf.mxu2  ;;  %v267_v9 = vpop.f32.mrf.mxu0 }
 0x12e   :  { %v432_v10 = vadd.f32 %v431_v8, %v372_v7 }
 0x130   :  { %v435_v11 = vmax.f32 %v432_v10, 0.0 }
 0x132   :  { %v453_v12 = vpack.c.bf16 %v435_v11, %v435_v11 }
 0x134   :  { %510 = vmatmul.bf16.vlgmr.msrb.gmra.mxu3 %v453_v12 }
 0x135   :  { %v433_v13 = vpop.f32.mrf.mxu2 }
 0x1a9   :  { %v345_v15 = vpop.f32.mrf.mxu1 }
 0x1aa   :  { %v346_v16 = vadd.f32 %v345_v15, %v286_v14 }
 0x1ac   :  { %v349_v18 = vmax.f32 %v346_v16, 0.0 }
 0x1ae   :  { %v352_v19 = vmul.f32 %v350_v17, %v349_v18 }
 0x1b0   :  { %353 = vadd.xlane.f32.xlu0 %v352_v19 }
 0x1b1   :  { %v347_v20 = vpop.f32.mrf.mxu1 }
 0x1b7   :  { %v511_v22 = vpop.f32.mrf.mxu3 }
 0x1b8   :  { %v512_v23 = vadd.f32 %v511_v22, %v452_v21 }
 0x1ba   :  { %v515_v25 = vmax.f32 %v512_v23, 0.0 }
 0x1bc   :  { %v517_v26 = vmul.f32 %v516_v24, %v515_v25 }
 0x1be   :  { %518 = vadd.xlane.f32.xlu0 %v517_v26 }
 0x1bf   :  { %v513_v27 = vpop.f32.mrf.mxu3 }
 0x223   :  { %v354_v28 = vpop.xlane.xlu0 %353 }
 0x224   :  { %v355_v31 = vadd.f32 %v354_v28, %v351_v29 }
 0x231   :  { %v519_v30 = vpop.xlane.xlu0 %518 }
 0x232   :  { %v520_v32 = vadd.f32 %v519_v30, %v351_v29 }
 0x234   :  { %v522_v33 = vsel %vm521_vm3, %v355_v31, %v520_v32 }
 0x235   :  { %524 = vst.msk [vmem:[%s903_s5] sm:$0xff] %vm523_vm4, %v522_v33 }
 0x236   :  { %529 = vsyncpa [#allocation3], 1 }
 0x237   :  { %530 = vsyncpa [#allocation5], 1 }
 0x238   :  { %531 = vsyncpa [#allocation8], 1 }

// kernel: tpu_custom_call.1
= control target key start
LH: loop header
LB: loop body
LE: loop exit
PB: predicated region body
PF: predicated region fallthrough
CT: control target
= control target key end

     0   :  { %10 = vsyncpa [#allocation3], 0  ;;  %s898_s0 = inlined_call_operand.hbm [shape: bf16[8,16], index: 0, kind: input, shape index: {}]   ;;  %s899_s1 = inlined_call_operand.hbm [shape: bf16[8,8], index: 1, kind: input, shape index: {}]   ;;  %s900_s2 = inlined_call_operand.hbm [shape: bf16[24,256], index: 2, kind: input, shape index: {}]   ;;  %s901_s3 = inlined_call_operand.hbm [shape: bf16[512,128], index: 3, kind: input, shape index: {}]   ;;  %s902_s4 = inlined_call_operand.hbm [shape: f32[8,256], index: 4, kind: input, shape index: {}]   ;;  %s903_s5 = inlined_call_operand.vmem [shape: f32[8,2], index: 5, kind: output, shape index: {}]  }
   0x1   :  { %11 = vsyncpa [#allocation5], 0  ;;  %s29_s20 = sshll.u32 %s899_s1, 4  ;;  %s30_s20 = int_to_ptr.hbm [resolvable:$true] %s29_s20 }
   0x2   :  { %12 = vsyncpa [#allocation8], 0  ;;  %s841_s21 = smov [#allocation4]   ;;  %s52_s25 = sshll.u32 %s901_s3, 4  ;;  %s53_s25 = int_to_ptr.hbm [resolvable:$true] %s52_s25 }
   0x3   :  { %s31_s22 = sshll.u32 %s841_s21, 4  ;;  %s842_s26 = smov [#allocation7]   ;;  %s32_s22 = int_to_ptr.vmem [resolvable:$true] %s31_s22 }
   0x4   :  { %34 = dma.hbm_to_vmem [thread:$0]  %s30_s20, 64, %s32_s22, [#allocation5]  }
   0x5   :  { %s54_s27 = sshll.u32 %s842_s26, 4  ;;  %s843_s28 = smov 64   ;;  %s55_s27 = int_to_ptr.vmem [resolvable:$true] %s54_s27 }
   0x6   :  { %s844_s29 = smov 4   ;;  %s18_s1 = sshll.u32 %s898_s0, 4  ;;  %s19_s1 = int_to_ptr.hbm [resolvable:$true] %s18_s1 }
   0x7   :  { %60 = dma.hbm_to_vmem [thread:$0]  %s53_s25, 4096, %s55_s27, [#allocation8], %s843_s28, %s843_s28, %s844_s29  }
   0x8   :  { %s845_s7 = smov [#allocation2]   ;;  %s39_s3 = sshll.u32 %s900_s2, 4  ;;  %s40_s3 = int_to_ptr.hbm [resolvable:$true] %s39_s3 }
   0x9   :  { %s20_s8 = sshll.u32 %s845_s7, 4  ;;  %s846_s11 = smov [#allocation6]   ;;  %s21_s8 = int_to_ptr.vmem [resolvable:$true] %s20_s8 }
   0xa   :  { %23 = dma.hbm_to_vmem [thread:$0]  %s19_s1, 64, %s21_s8, [#allocation3]  }
   0xb   :  { %s41_s12 = sshll.u32 %s846_s11, 4  ;;  %s847_s13 = smov 128   ;;  %s42_s12 = int_to_ptr.vmem [resolvable:$true] %s41_s12 }
   0xc   :  { %s848_s14 = smov 8   ;;  %s66_s0 = sshll.u32 %s902_s4, 4  ;;  %s67_s0 = int_to_ptr.hbm [resolvable:$true] %s66_s0 }
   0xd   :  { %47 = dma.hbm_to_vmem [thread:$0]  %s40_s3, 384, %s42_s12, [#allocation5], %s847_s13, %s847_s13, %s848_s14  }
   0xe   :  { %s849_s17 = smov [#allocation9]  }
   0xf   :  { %s68_s18 = sshll.u32 %s849_s17, 4  ;;  %s69_s18 = int_to_ptr.vmem [resolvable:$true] %s68_s18 }
  0x10   :  { %71 = dma.hbm_to_vmem [thread:$0]  %s67_s0, 256, %s69_s18, [#allocation8]  }
  0x11   :  { %835 = dma.done.wait [#allocation3], 64  }
  0x12   :  { %836 = vsyncadd [#allocation3], 4294967232 }
  0x13   :  { %837 = dma.done.wait [#allocation5], 448  }
  0x14   :  { %838 = vsyncadd [#allocation5], 4294966848 }
  0x15   :  { %839 = dma.done.wait [#allocation8], 4352  }
  0x16   :  { %840 = vsyncadd [#allocation8], 4294962944  ;;  %v536_v0 = vld [vmem:[#allocation6] sm:$0xf]  ;;  %v673_v1 = vld [vmem:[#allocation6 + $0x4] sm:$0xf0] }
  0x17   :  { %v672_v2 = vld [vmem:[#allocation6 + $0x4] sm:$0xf]  ;;  %v537_v3 = vor.u32 %v673_v1, %v536_v0  ;;  %v538_v4 = vld [vmem:[#allocation6 + $0x8] sm:$0xf0]  ;;  %v97_v5 = vld [vmem:[#allocation6 + $0x10] sm:$0xff]  ;;  %vm107_vm0 = vcmask 1043456  }
  0x18   :  { %v541_v6 = vor.u32 %v672_v2, %v538_v4  ;;  %v99_v7 = vunpack.c.l.b16 %v97_v5  ;;  %v100_v8 = vunpack.c.h.b16 %v97_v5  ;;  %v697_v9 = vld [vmem:[#allocation7 + $0x78] sm:$0xff]  ;;  %v93_v10 = vld [vmem:[#allocation2] sm:$0xf]  ;;  %vm150_vm1 = vcmask 130048   ;;  %v696_v14 = vld [vmem:[#allocation7 + $0x70] sm:$0xff] }
  0x19   :  { %161 = vmatpush.bf16.msra.mxu2 %v537_v3  ;;  %v681_v13 = vld [vmem:[#allocation7 + $0x38] sm:$0xff]  ;;  %v96_v17 = vld [vmem:[#allocation4] sm:$0xf]  ;;  %vm103_vm2 = vcmask 64512   ;;  %v680_v18 = vld [vmem:[#allocation7 + $0x30] sm:$0xff]  ;;  %vm521_vm3 = vcmask 7168  }
  0x1a   :  { %174 = vmatpush.bf16.msra.mxu3 %v541_v6  ;;  %v101_v11 = vpack.c.b16 %v99_v7, %v99_v7  ;;  %v102_v12 = vpack.c.b16 %v100_v8, %v100_v8  ;;  %v695_v19 = vld [vmem:[#allocation7 + $0x68] sm:$0xff]  ;;  %v694_v21 = vld [vmem:[#allocation7 + $0x60] sm:$0xff]  ;;  %v693_v23 = vld [vmem:[#allocation7 + $0x58] sm:$0xff]  ;;  %vm523_vm4 = vcmask 15360  }
  0x1b   :  { %v679_v20 = vld [vmem:[#allocation7 + $0x28] sm:$0xff]  ;;  %v678_v22 = vld [vmem:[#allocation7 + $0x20] sm:$0xff]  ;;  %v677_v24 = vld [vmem:[#allocation7 + $0x18] sm:$0xff] }
  0x1c   :  { %v109_v15 = vsel %vm107_vm0, %v101_v11, 0  ;;  %v112_v16 = vsel %vm107_vm0, %v102_v12, 0  ;;  %542 = vmatmul.msk.bf16.vlgmr.msra.gmra.mxu2 %vm150_vm1, %v93_v10  ;;  %v676_v25 = vld [vmem:[#allocation7 + $0x10] sm:$0xff]  ;;  %v675_v27 = vld [vmem:[#allocation7 + $0x8] sm:$0xff]  ;;  %v674_v29 = vld [vmem:[#allocation7] sm:$0xff] }
  0x1d   :  { %422 = vmatpush.bf16.msrb.mxu2 %v697_v9  ;;  %121 = vmatpush.bf16.msra.mxu0 %v109_v15  ;;  %v692_v26 = vld [vmem:[#allocation7 + $0x50] sm:$0xff]  ;;  %v691_v28 = vld [vmem:[#allocation7 + $0x48] sm:$0xff]  ;;  %v690_v30 = vld [vmem:[#allocation7 + $0x40] sm:$0xff] }
  0x1e   :  { %134 = vmatpush.bf16.msra.mxu1 %v112_v16  ;;  %543 = vmatmul.msk.bf16.vlgmr.msra.gmra.mxu3 %vm150_vm1, %v93_v10  ;;  %v689_v31 = vld [vmem:[#allocation7 + $0xb8] sm:$0xff]  ;;  %v688_v33 = vld [vmem:[#allocation7 + $0xb0] sm:$0xff]  ;;  %v687_v35 = vld [vmem:[#allocation7 + $0xa8] sm:$0xff] }
  0x1f   :  { %v705_v32 = vld [vmem:[#allocation7 + $0xf8] sm:$0xff]  ;;  %v704_v34 = vld [vmem:[#allocation7 + $0xf0] sm:$0xff]  ;;  %v703_v36 = vld [vmem:[#allocation7 + $0xe8] sm:$0xff] }
  0x20   :  { %532 = vmatmul.msk.bf16.vlgmr.msra.gmra.mxu0 %vm103_vm2, %v96_v17  ;;  %502 = vmatpush.bf16.msrb.mxu3 %v705_v32  ;;  %v686_v37 = vld [vmem:[#allocation7 + $0xa0] sm:$0xff]  ;;  %v685_v39 = vld [vmem:[#allocation7 + $0x98] sm:$0xff]  ;;  %v684_v42 = vld [vmem:[#allocation7 + $0x90] sm:$0xff] }
  0x21   :  { %256 = vmatpush.bf16.msrb.mxu0 %v681_v13  ;;  %423 = vmatpush.bf16.msrb.mxu2 %v696_v14  ;;  %v702_v38 = vld [vmem:[#allocation7 + $0xe0] sm:$0xff]  ;;  %v701_v40 = vld [vmem:[#allocation7 + $0xd8] sm:$0xff]  ;;  %v683_v61 = vld [vmem:[#allocation7 + $0x88] sm:$0xff] }
  0x22   :  { %533 = vmatmul.msk.bf16.vlgmr.msra.gmra.mxu1 %vm103_vm2, %v96_v17  ;;  %v180_v41 = vld [vmem:[#allocation9] ss:$8 sm:$0x3]  ;;  %v700_v62 = vld [vmem:[#allocation7 + $0xd0] sm:$0xff]  ;;  %v206_v2 = vld [vmem:[#allocation9 + $0x1] ss:$0 sm:$0xff] }
  0x23   :  { %336 = vmatpush.bf16.msrb.mxu1 %v689_v31  ;;  %v182_v45 = vperm.slane %v180_v41, 0  ;;  %v183_v48 = vperm.slane %v180_v41, 1  ;;  %v682_v63 = vld [vmem:[#allocation7 + $0x80] sm:$0xff]  ;;  %v699_v0 = vld [vmem:[#allocation7 + $0xc8] sm:$0xff] }
  0x24   :  { %503 = vmatpush.bf16.msrb.mxu3 %v704_v34  ;;  %v698_v1 = vld [vmem:[#allocation7 + $0xc0] sm:$0xff]  ;;  %v372_v7 = vld [vmem:[#allocation9 + $0x9] ss:$0 sm:$0xff] }
  0x25   :  { %257 = vmatpush.bf16.msrb.mxu0 %v680_v18  ;;  %424 = vmatpush.bf16.msrb.mxu2 %v695_v19  ;;  %v286_v14 = vld [vmem:[#allocation9 + $0x2] ss:$0 sm:$0xff]  ;;  %v350_v17 = vld [vmem:[#allocation9 + $0x3] ss:$0 sm:$0xff] }
  0x27   :  { %337 = vmatpush.bf16.msrb.mxu1 %v688_v33 }
  0x28   :  { %504 = vmatpush.bf16.msrb.mxu3 %v703_v36 }
  0x29   :  { %258 = vmatpush.bf16.msrb.mxu0 %v679_v20  ;;  %425 = vmatpush.bf16.msrb.mxu2 %v694_v21  ;;  %v452_v21 = vld [vmem:[#allocation9 + $0xa] ss:$0 sm:$0xff] }
  0x2b   :  { %338 = vmatpush.bf16.msrb.mxu1 %v687_v35 }
  0x2c   :  { %505 = vmatpush.bf16.msrb.mxu3 %v702_v38 }
  0x2d   :  { %259 = vmatpush.bf16.msrb.mxu0 %v678_v22  ;;  %426 = vmatpush.bf16.msrb.mxu2 %v693_v23 }
  0x2f   :  { %339 = vmatpush.bf16.msrb.mxu1 %v686_v37 }
  0x30   :  { %506 = vmatpush.bf16.msrb.mxu3 %v701_v40 }
  0x31   :  { %260 = vmatpush.bf16.msrb.mxu0 %v677_v24  ;;  %427 = vmatpush.bf16.msrb.mxu2 %v692_v26  ;;  %v516_v24 = vld [vmem:[#allocation9 + $0xb] ss:$0 sm:$0xff] }
  0x33   :  { %340 = vmatpush.bf16.msrb.mxu1 %v685_v39 }
  0x34   :  { %507 = vmatpush.bf16.msrb.mxu3 %v700_v62 }
  0x35   :  { %261 = vmatpush.bf16.msrb.mxu0 %v676_v25  ;;  %428 = vmatpush.bf16.msrb.mxu2 %v691_v28 }
  0x37   :  { %341 = vmatpush.bf16.msrb.mxu1 %v684_v42 }
  0x38   :  { %508 = vmatpush.bf16.msrb.mxu3 %v699_v0 }
  0x39   :  { %262 = vmatpush.bf16.msrb.mxu0 %v675_v27  ;;  %429 = vmatpush.bf16.msrb.mxu2 %v690_v30 }
  0x3b   :  { %342 = vmatpush.bf16.msrb.mxu1 %v683_v61 }
  0x3c   :  { %509 = vmatpush.bf16.msrb.mxu3 %v698_v1 }
  0x3d   :  { %263 = vmatpush.bf16.msrb.mxu0 %v674_v29  ;;  %v351_v29 = vld [vmem:[#allocation9 + $0x4] ss:$0 sm:$0xff] }
  0x3f   :  { %343 = vmatpush.bf16.msrb.mxu1 %v682_v63 }
  0x9d   :  { %v123_v43 = vpop.f32.mrf.mxu0 }
  0x9f   :  { %v136_v44 = vpop.f32.mrf.mxu1  ;;  %v163_v46 = vpop.f32.mrf.mxu2 }
  0xa0   :  { %v164_v47 = vadd.f32 %v163_v46, %v123_v43 }
  0xa1   :  { %v176_v49 = vpop.f32.mrf.mxu3 }
  0xa2   :  { %v186_v50 = vadd.f32 %v182_v45, %v164_v47  ;;  %v177_v51 = vadd.f32 %v176_v49, %v136_v44 }
  0xa4   :  { %v188_v52 = vmax.f32 %v186_v50, 0.0  ;;  %v187_v53 = vadd.f32 %v183_v48, %v177_v51 }
  0xa5   :  { %v125_v54 = vpop.f32.mrf.mxu0 }
  0xa6   :  { %v207_v56 = vpack.c.bf16 %v188_v52, %v188_v52  ;;  %v189_v57 = vmax.f32 %v187_v53, 0.0 }
  0xa7   :  { %v138_v55 = vpop.f32.mrf.mxu1  ;;  %v165_v58 = vpop.f32.mrf.mxu2 }
  0xa8   :  { %v373_v59 = vpack.c.bf16 %v189_v57, %v189_v57  ;;  %264 = vmatmul.bf16.vlgmr.msrb.gmra.mxu0 %v207_v56 }
  0xa9   :  { %v178_v60 = vpop.f32.mrf.mxu3 }
  0xaa   :  { %430 = vmatmul.bf16.vlgmr.msrb.gmra.mxu2 %v373_v59 }
 0x125   :  { %v265_v3 = vpop.f32.mrf.mxu0 }
 0x126   :  { %v266_v4 = vadd.f32 %v265_v3, %v206_v2 }
 0x128   :  { %v269_v5 = vmax.f32 %v266_v4, 0.0 }
 0x12a   :  { %v287_v6 = vpack.c.bf16 %v269_v5, %v269_v5 }
 0x12c   :  { %344 = vmatmul.bf16.vlgmr.msrb.gmra.mxu1 %v287_v6 }
 0x12d   :  { %v431_v8 = vpop.f32.mrf.mxu2  ;;  %v267_v9 = vpop.f32.mrf.mxu0 }
 0x12e   :  { %v432_v10 = vadd.f32 %v431_v8, %v372_v7 }
 0x130   :  { %v435_v11 = vmax.f32 %v432_v10, 0.0 }
 0x132   :  { %v453_v12 = vpack.c.bf16 %v435_v11, %v435_v11 }
 0x134   :  { %510 = vmatmul.bf16.vlgmr.msrb.gmra.mxu3 %v453_v12 }
 0x135   :  { %v433_v13 = vpop.f32.mrf.mxu2 }
 0x1a9   :  { %v345_v15 = vpop.f32.mrf.mxu1 }
 0x1aa   :  { %v346_v16 = vadd.f32 %v345_v15, %v286_v14 }
 0x1ac   :  { %v349_v18 = vmax.f32 %v346_v16, 0.0 }
 0x1ae   :  { %v352_v19 = vmul.f32 %v350_v17, %v349_v18 }
 0x1b0   :  { %353 = vadd.xlane.f32.xlu0 %v352_v19 }
 0x1b1   :  { %v347_v20 = vpop.f32.mrf.mxu1 }
 0x1b7   :  { %v511_v22 = vpop.f32.mrf.mxu3 }
 0x1b8   :  { %v512_v23 = vadd.f32 %v511_v22, %v452_v21 }
 0x1ba   :  { %v515_v25 = vmax.f32 %v512_v23, 0.0 }
 0x1bc   :  { %v517_v26 = vmul.f32 %v516_v24, %v515_v25 }
 0x1be   :  { %518 = vadd.xlane.f32.xlu0 %v517_v26 }
 0x1bf   :  { %v513_v27 = vpop.f32.mrf.mxu3 }
 0x223   :  { %v354_v28 = vpop.xlane.xlu0 %353 }
 0x224   :  { %v355_v31 = vadd.f32 %v354_v28, %v351_v29 }
 0x231   :  { %v519_v30 = vpop.xlane.xlu0 %518 }
 0x232   :  { %v520_v32 = vadd.f32 %v519_v30, %v351_v29 }
 0x234   :  { %v522_v33 = vsel %vm521_vm3, %v355_v31, %v520_v32 }
 0x235   :  { %524 = vst.msk [vmem:[%s903_s5] sm:$0xff] %vm523_vm4, %v522_v33 }
 0x236   :  { %529 = vsyncpa [#allocation3], 1 }
 0x237   :  { %530 = vsyncpa [#allocation5], 1 }
 0x238   :  { %531 = vsyncpa [#allocation8], 1 }

</bundles_post_ra>
